<compile_context>
chip_gen: v7x
topology: tpu7x:2x2x1
jax: 0.10.0
libtpu: 0.0.40
codegen_flags: <defaults>
</compile_context>

<pallas_src>
import functools
import math

import jax
import jax.numpy as jnp
from jax import lax
from jax.experimental import pallas as pl
from jax.experimental.pallas import tpu as pltpu


def _label_smoothing_kernel(x_ref, tgt_ref, row_loss_ref, td_ref, *,
                            padding_idx, base, confidence, log_base, log_conf):
    x = x_ref[...].astype(jnp.float32)            # [TILE_N, V] log-probs
    tgt = tgt_ref[...]                            # [TILE_N, 1] int32 targets
    tile_n, v = x.shape

    col = lax.broadcasted_iota(jnp.int32, (tile_n, v), 1)
    is_tgt = col == tgt                           # scatter_(1, target, confidence)

    td = jnp.where(is_tgt, jnp.float32(confidence), jnp.float32(base))
    log_td = jnp.where(is_tgt, jnp.float32(log_conf), jnp.float32(log_base))

    # zero the padding column and entire rows whose target is the padding index
    zero = (col == padding_idx) | (tgt == padding_idx)
    td = jnp.where(zero, 0.0, td)

    # KLDiv pointwise term with the 0*log(0)=0 convention
    terms = jnp.where(td > 0.0, td * (log_td - x), 0.0)

    td_ref[...] = td.astype(td_ref.dtype)
    row_loss_ref[...] = jnp.sum(terms, axis=1, keepdims=True)


def label_smoothing(x, target, *, size, padding_idx, smoothing, tile_n=256):
    """x: [N, size] float32 log-probs; target: [N] int class ids.

    Returns (loss_scalar, true_dist[N, size]) matching the PyTorch module's
    forward() return value and its self.true_dist side value."""
    n, v = x.shape
    assert v == size and size > 2, "size must equal x.shape[1] and exceed 2"

    confidence = 1.0 - smoothing
    base = smoothing / (size - 2)
    # constants masked out of the loss when the corresponding prob is 0
    log_base = math.log(base) if base > 0.0 else 0.0
    log_conf = math.log(confidence) if confidence > 0.0 else 0.0

    # row tiling: multiple of 8 (f32 sublane), capped to the rounded-up problem
    tile_n = max(8, min(tile_n, ((n + 7) // 8) * 8))
    n_pad = pl.cdiv(n, tile_n) * tile_n
    if n_pad != n:
        # padded rows get target == padding_idx -> zero loss / zero true_dist
        x = jnp.pad(x, ((0, n_pad - n), (0, 0)))
        target = jnp.pad(target, (0, n_pad - n), constant_values=padding_idx)
    tgt2d = target.astype(jnp.int32).reshape(n_pad, 1)

    grid = (n_pad // tile_n,)
    kernel = functools.partial(
        _label_smoothing_kernel, padding_idx=padding_idx, base=base,
        confidence=confidence, log_base=log_base, log_conf=log_conf)

    row_loss, true_dist = pl.pallas_call(
        kernel,
        grid=grid,
        in_specs=[pl.BlockSpec((tile_n, v), lambda i: (i, 0)),
                  pl.BlockSpec((tile_n, 1), lambda i: (i, 0))],
        out_specs=[pl.BlockSpec((tile_n, 1), lambda i: (i, 0)),
                   pl.BlockSpec((tile_n, v), lambda i: (i, 0))],
        out_shape=(jax.ShapeDtypeStruct((n_pad, 1), jnp.float32),
                   jax.ShapeDtypeStruct((n_pad, v), jnp.float32)),
        compiler_params=pltpu.CompilerParams(
            dimension_semantics=("parallel",)),
        cost_estimate=pl.CostEstimate(
            flops=8 * n_pad * v,
            transcendentals=0,
            bytes_accessed=4 * (2 * n_pad * v + 2 * n_pad)),
    )(x, tgt2d)

    loss = jnp.sum(row_loss)          # tiny final reduction over per-row sums
    return loss, true_dist[:n]


def _reference(x, target, size, padding_idx, smoothing):
    """Pure-JAX mirror of the PyTorch LabelSmoothing forward."""
    confidence = 1.0 - smoothing
    base = smoothing / (size - 2)
    n, v = x.shape
    td = jnp.full((n, v), base, dtype=jnp.float32)
    td = td.at[jnp.arange(n), target].set(confidence)
    td = td.at[:, padding_idx].set(0.0)
    td = jnp.where((target == padding_idx)[:, None], 0.0, td)
    safe = jnp.where(td > 0.0, td, 1.0)
    loss = jnp.sum(jnp.where(td > 0.0, td * (jnp.log(safe) - x), 0.0))
    return loss, td


if __name__ == "__main__":
    B, S, V = 2, 8, 32            # batch, seq, vocab size (module "size")
    N = B * S
    padding_idx = 0
    smoothing = 0.1

    key = jax.random.PRNGKey(0)
    k_logit, k_tgt = jax.random.split(key)

    logits = jax.random.normal(k_logit, (N, V), dtype=jnp.float32)
    x = jax.nn.log_softmax(logits, axis=-1)       # KLDivLoss expects log-probs
    target = jax.random.randint(k_tgt, (N,), 0, V, dtype=jnp.int32)
    target = target.at[3].set(padding_idx)        # exercise the padded-row path
    target = target.at[10].set(padding_idx)

    loss, true_dist = label_smoothing(
        x, target, size=V, padding_idx=padding_idx, smoothing=smoothing,
        tile_n=8)                                  # small tile -> grid of 2 steps
    loss = jax.block_until_ready(loss)

    ref_loss, ref_td = _reference(x, target, V, padding_idx, smoothing)
    assert true_dist.shape == (N, V)
    assert jnp.allclose(true_dist, ref_td, atol=1e-6, rtol=1e-6), "true_dist mismatch"
    assert jnp.allclose(loss, ref_loss, atol=1e-4, rtol=1e-4), (loss, ref_loss)
    print("KERNEL_OK")
</pallas_src>

<mosaic_0001>
module attributes {stable_mosaic.version = 11 : i64} {
  func.func @_label_smoothing_kernel(%arg0: i32, %arg1: memref<8x32xf32, #tpu.memory_space<vmem>>, %arg2: memref<8x1xi32, #tpu.memory_space<vmem>>, %arg3: memref<8x1xf32, #tpu.memory_space<vmem>>, %arg4: memref<8x32xf32, #tpu.memory_space<vmem>>) attributes {dimension_semantics = [#tpu.dimension_semantics<parallel>], iteration_bounds = array<i64: 2>, scalar_prefetch = 0 : i64, scratch_operands = 0 : i64, tpu.core_type = #tpu.core_type<tc>, window_params = [{transform_indices = @transform_0, window_bounds = array<i64: 8, 32>}, {transform_indices = @transform_1, window_bounds = array<i64: 8, 1>}, {transform_indices = @transform_2, window_bounds = array<i64: 8, 1>}, {transform_indices = @transform_3, window_bounds = array<i64: 8, 32>}]} {
    %c0 = arith.constant 0 : index
    %c0_0 = arith.constant 0 : index
    %0 = vector.load %arg1[%c0, %c0_0] : memref<8x32xf32, #tpu.memory_space<vmem>>, vector<8x32xf32>
    %c0_1 = arith.constant 0 : index
    %c0_2 = arith.constant 0 : index
    %1 = vector.load %arg2[%c0_1, %c0_2] : memref<8x1xi32, #tpu.memory_space<vmem>>, vector<8x1xi32>
    %2 = tpu.iota {dimensions = array<i32: 1>} : vector<8x32xi32>
    %3 = vector.broadcast %1 : vector<8x1xi32> to vector<8x32xi32>
    %4 = arith.cmpi eq, %2, %3 : vector<8x32xi32>
    %cst = arith.constant 0.899999976 : f32
    %cst_3 = arith.constant 0.00333333341 : f32
    %5 = vector.broadcast %cst : f32 to vector<8x32xf32>
    %6 = vector.broadcast %cst_3 : f32 to vector<8x32xf32>
    %7 = arith.select %4, %5, %6 : vector<8x32xi1>, vector<8x32xf32>
    %cst_4 = arith.constant -0.105360515 : f32
    %cst_5 = arith.constant -5.70378256 : f32
    %8 = vector.broadcast %cst_4 : f32 to vector<8x32xf32>
    %9 = vector.broadcast %cst_5 : f32 to vector<8x32xf32>
    %10 = arith.select %4, %8, %9 : vector<8x32xi1>, vector<8x32xf32>
    %c0_i32 = arith.constant 0 : i32
    %11 = vector.broadcast %c0_i32 : i32 to vector<8x32xi32>
    %12 = arith.cmpi eq, %2, %11 : vector<8x32xi32>
    %c0_i32_6 = arith.constant 0 : i32
    %13 = vector.broadcast %c0_i32_6 : i32 to vector<8x1xi32>
    %14 = arith.cmpi eq, %1, %13 : vector<8x1xi32>
    %15 = vector.broadcast %14 : vector<8x1xi1> to vector<8x32xi1>
    %16 = arith.ori %12, %15 : vector<8x32xi1>
    %cst_7 = arith.constant 0.000000e+00 : f32
    %17 = vector.broadcast %cst_7 : f32 to vector<8x32xf32>
    %18 = arith.select %16, %17, %7 : vector<8x32xi1>, vector<8x32xf32>
    %cst_8 = arith.constant 0.000000e+00 : f32
    %19 = vector.broadcast %cst_8 : f32 to vector<8x32xf32>
    %20 = arith.cmpf ogt, %18, %19 : vector<8x32xf32>
    %21 = arith.subf %10, %0 : vector<8x32xf32>
    %22 = arith.mulf %18, %21 : vector<8x32xf32>
    %cst_9 = arith.constant 0.000000e+00 : f32
    %23 = vector.broadcast %cst_9 : f32 to vector<8x32xf32>
    %24 = arith.select %20, %22, %23 : vector<8x32xi1>, vector<8x32xf32>
    %c0_10 = arith.constant 0 : index
    %c0_11 = arith.constant 0 : index
    %25 = vector.load %arg4[%c0_10, %c0_11] : memref<8x32xf32, #tpu.memory_space<vmem>>, vector<8x32xf32>
    tpu.vector_store %arg4[%c0_10, %c0_11], %18 {strides = array<i32>} : memref<8x32xf32, #tpu.memory_space<vmem>>, vector<8x32xf32>,
    %cst_12 = arith.constant dense<0.000000e+00> : vector<8xf32>
    %26 = vector.multi_reduction <add>, %24, %cst_12 [1] : vector<8x32xf32> to vector<8xf32>
    %27 = vector.shape_cast %26 : vector<8xf32> to vector<8x1xf32>
    %c0_13 = arith.constant 0 : index
    %c0_14 = arith.constant 0 : index
    %28 = vector.load %arg3[%c0_13, %c0_14] : memref<8x1xf32, #tpu.memory_space<vmem>>, vector<8x1xf32>
    tpu.vector_store %arg3[%c0_13, %c0_14], %27 {strides = array<i32>} : memref<8x1xf32, #tpu.memory_space<vmem>>, vector<8x1xf32>,
    return
  }
  func.func @transform_0(%arg0: i32) -> (i32, i32) {
    %c0_i32 = arith.constant 0 : i32
    %c0_i32_0 = arith.constant 0 : i32
    return %arg0, %c0_i32 : i32, i32
  }
  func.func @transform_1(%arg0: i32) -> (i32, i32) {
    %c0_i32 = arith.constant 0 : i32
    %c0_i32_0 = arith.constant 0 : i32
    return %arg0, %c0_i32 : i32, i32
  }
  func.func @transform_2(%arg0: i32) -> (i32, i32) {
    %c0_i32 = arith.constant 0 : i32
    %c0_i32_0 = arith.constant 0 : i32
    return %arg0, %c0_i32 : i32, i32
  }
  func.func @transform_3(%arg0: i32) -> (i32, i32) {
    %c0_i32 = arith.constant 0 : i32
    %c0_i32_0 = arith.constant 0 : i32
    return %arg0, %c0_i32 : i32, i32
  }
}

</mosaic_0001>

<bundles_post_ra>
// kernel: tpu_custom_call.1
= control target key start
LH: loop header
LB: loop body
LE: loop exit
PB: predicated region body
PF: predicated region fallthrough
CT: control target
= control target key end

     0   :  { %9 = vsyncpa [#allocation3], 0  ;;  %s588_s0 = inlined_call_operand.vmem [shape: f32[16,32], index: 0, kind: input, shape index: {}]   ;;  %s589_s1 = inlined_call_operand.vmem [shape: s32[16,1], index: 1, kind: input, shape index: {}]   ;;  %s590_s2 = inlined_call_operand.vmem [shape: f32[16,1], index: 2, kind: output, shape index: {0}]   ;;  %s591_s3 = inlined_call_operand.hbm [shape: f32[16,32], index: 3, kind: output, shape index: {1}]  }
   0x1   :  { %11 = vsyncpa [#allocation3 + $0x1], 0  ;;  %s483_s12 = smov 0   ;;  %s485_s13 = smov 0  }
   0x2   :  { %s487_s14 = smov 0   ;;  %s489_s15 = smov 0  }
   0x3 LB: > { %s504_s16 = sadd.s32 4294967295, %s457_s15   ;;  %s340_s17 = sadd.s32 4294967294, %s457_s15   ;;  %s457_s15 = sphi %s489_s15, %s597_s15   ;;  %s453_s14 = sphi %s487_s14, %s596_s14   ;;  %s449_s13 = sphi %s485_s13, %s595_s13   ;;  %s445_s12 = sphi %s483_s12, %s594_s12  }
   0x4   : > { %s508_s18 = sadd.s32 1, %s457_s15   ;;  %s102_s19 = sadd.s32 1, %s453_s14 }
   0x5   : > { %s99_s20 = ssub.s32 %s457_s15, %s508_s18  ;;  %p112_p0 = scmp.ne.s32.totalorder %s453_s14, %s449_s13 }
   0x6   : > { %p100_p1 = scmp.eq.s32.totalorder %s99_s20, 0  ;;  %p113_p2 = scmp.eq.s32.totalorder %s504_s16, 1 }
   0x7   : > { %p118_p3 = scmp.ne.s32.totalorder %s449_s13, %s445_s12  ;;  %p119_p4 = scmp.eq.s32.totalorder %s340_s17, 1 }
   0x8   : > { %s519_s21 = scalar_select %p100_p1, %s453_s14, %s102_s19  }
   0x9   : > { %p521_p5 = por %p113_p2, %p112_p0  ;;  %p525_p6 = por %p119_p4, %p118_p3 }
   0xa   : > { %p343_p7 = scmp.ge.s32.totalorder %s457_s15, 1  ;;  %p151_p8 = scmp.lt.s32.totalorder %s457_s15, 3 }
   0xc   : > { %p152_p9 = pnand %p343_p7, %p151_p8 }
   0xd   : > { %p182_p10 = scmp.lt.s32.totalorder (!%p152_p9), %s504_s16, 1  ;;  %v459_v0 = vmov (!%p152_p9), 0   ;;  %v196_v3 = vlaneseq (!%p152_p9)  ;;  %s179_s29 = sand.u32 (!%p152_p9), 1, %s449_s13   ;;  %v460_v7 = vmov (!%p152_p9), -5.7037826   ;;  %vm217_vm4 = vcmask (!%p152_p9), 261120  }
   0xe   : > { %155 = sbr.rel (%p152_p9) target bundleno = 308 (0x134), region = 28  ;;  %394 = vset.pattern.permute.xlu0 (!%p152_p9), %v459_v0  ;;  %s344_s6 = sshll.u32 (!%p152_p9), %s179_s29, 3  ;;  %v461_v10 = vmov (!%p152_p9), 0.0033333334  }
   0xf   : > { %v197_v4 = vand.u32 (!%p152_p9), 127, %v196_v3  ;;  %s181_s7 = scalar_lea.vmem (!%p152_p9), [#allocation2], %s344_s6  ;;  %s349_s8 = sshll.u32 (!%p152_p9), %s504_s16, 7 }
  0x10   : > { %s245_s9 = sshll.u32 (!%p152_p9), %s181_s7, 4  ;;  %s548_s17 = scalar_lea.hbm (!%p152_p9), %s591_s3, %s349_s8  ;;  %s246_s9 = int_to_ptr.vmem [resolvable:$true] %s245_s9 }
  0x11   : > { %vm204_vm2 = vcmp.eq.s32.totalorder (!%p152_p9), %v197_v4, 0  ;;  %s229_s19 = scalar_lea.sflag (!%p152_p9), [#allocation3], %s179_s29  ;;  %s395_s20 = scalar_lea.vmem (!%p152_p9), %s246_s9, 128 }
  0x12   : > { %p396_p11 = scmp.ne.s32.totalorder (!%p152_p9), %s246_s9, %s395_s20 }
  0x14   : > { %p397_p12 = pnand (!%p152_p9), %p396_p11, %p521_p5 }
  0x15   : > { %s183_s24 = scalar_select %p182_p10, %s504_s16, 1 }
  0x16   : > { %p398_p13 = pneg %p397_p12 }
  0x17   : > { %s533_s25 = sshll.u32 %s183_s24, 3  ;;  %s462_s24 = smov [#allocation2]  }
  0x18   : > { %s189_s28 = scalar_lea.vmem %s589_s1, %s533_s25  ;;  %s185_s5 = scalar_lea.vmem %s588_s0, %s533_s25 }
  0x19   : > { %v195_v1 = vld [vmem:[%s189_s28] sm:$0xff]  ;;  %s399_s26 = sshll.u32 %s462_s24, 4  ;;  %s400_s26 = int_to_ptr.vmem [resolvable:$false] %s399_s26 }
  0x1a   : > { %199 = vperm.xlu0 %394, %v195_v1   ;;  %vm205_vm0 = vcmp.eq.s32.totalorder %v195_v1, 0  ;;  %v194_v6 = vld [vmem:[%s185_s5] sm:$0xff]  ;;  %s401_s27 = scalar_lea.vmem %s400_s26, 256  ;;  %p402_p0 = scmp.lt.s32.totalorder %s246_s9, %s400_s26 }
  0x1b   : > { %v206_v2 = vsel %vm205_vm0, 1, %v459_v0  ;;  %p403_p1 = scmp.lt.s32.totalorder %s401_s27, %s395_s20 }
  0x1d   : > { %p404_p2 = por %p403_p1, %p402_p0 }
  0x1e   : > { %208 = vperm.xlu0 %394, %v206_v2  }
  0x1f   : > { %p405_p3 = pnand %p404_p2, %p398_p13 }
  0x99   : > { %v200_v5 = vpop.permute.xlu0 %199 }
  0x9a   : > { %vm201_vm1 = vcmp.eq.s32.totalorder %v197_v4, %v200_v5 }
  0x9b   : > { %v203_v8 = vsel %vm201_vm1, -0.105360515, %v460_v7  ;;  %v202_v11 = vsel %vm201_vm1, 0.9, %v461_v10 }
  0x9c   : > { %v214_v12 = vsub.f32 %v203_v8, %v194_v6 }
  0x9d   : > { %v209_v9 = vpop.permute.xlu0 %208 }
  0x9e   : > { %vm210_vm3 = vcmp.eq.s32.totalorder %v209_v9, 1 }
  0x9f   : > { %vm211_vm5 = vmor %vm204_vm2, %vm210_vm3 }
  0xa0   : > { %v212_v13 = vsel %vm211_vm5, 0.0, %v202_v11 }
  0xa1   : > { %vm213_vm6 = vcmp.gt.f32.partialorder %v212_v13, 0.0  ;;  %v215_v14 = vmul.f32 %v214_v12, %v212_v13  ;;  %218 = vst.msk [vmem:[%s181_s7] sm:$0xff] %vm217_vm4, %v212_v13 }
  0xa3   : > { %v216_v15 = vsel %vm213_vm6, %v215_v14, 0.0 }
  0xa4   : > { %v219_v16 = vsel %vm217_vm4, %v216_v15, 0.0 }
  0xa5   : > { %220 = vadd.xlane.f32.xlu1 %v219_v16 }
  0xa6   : > { %408 = shalt.err (!%p405_p3)
}
  0xa7   : > { %s409_s16 = scalar_lea.hbm %s548_s17, 128  ;;  %s413_s30 = scalar_lea.hbm %s591_s3, 256 }
  0xa8   : > { %p410_p4 = scmp.ne.s32.totalorder %s548_s17, %s409_s16  ;;  %p414_p9 = scmp.lt.u32.totalorder %s548_s17, %s591_s3 }
  0xa9   : > { %p415_p10 = scmp.lt.u32.totalorder %s413_s30, %s409_s16  ;;  %p417_p12 = scmp.lt.u32.totalorder %s409_s16, %s548_s17 }
  0xaa   : > { %p411_p7 = pnand %p410_p4, %p521_p5 }
  0xab   : > { %p416_p11 = por %p415_p10, %p414_p9 }
  0xac   : > { %p412_p8 = pneg %p411_p7 }
  0xad   : > { %p418_p13 = por %p417_p12, %p416_p11 }
  0xaf   : > { %p419_p0 = pnand %p418_p13, %p412_p8 }
  0xb1   : > { %422 = shalt.err (!%p419_p0)
}
  0xb2   : > { %352 = dma.vmem_to_hbm [thread:$0]  (%p521_p5), %s246_s9, 128, %s548_s17, %s229_s19   ;;  %vm222_vm7 = vcmask 7168  }
  0xb3   : > { %s193_s8 = scalar_lea.vmem %s590_s2, %s533_s25 }
 0x132   : > { %v221_v17 = vpop.xlane.xlu1 %220 }
 0x133   : > { %223 = vst.msk [vmem:[%s193_s8] sm:$0xff] %vm222_vm7, %v221_v17 }
 0x134 PF: > { %p358_p1 = scmp.ge.s32.totalorder %s457_s15, 2  ;;  %s264_s10 = sand.u32 1, %s445_s12  }
 0x135   : > { %s265_s11 = scalar_lea.sflag [#allocation3], %s264_s10 }
 0x136   : > { %p355_p2 = pnand %p358_p1, %p525_p6 }
 0x138   : > { %440 = dma.done.wait (!%p355_p2), %s265_s11, 128  }
 0x139   : > { %442 = vsyncadd (!%p355_p2), %s265_s11, 4294967168  ;;  %p14_p5 = scmp.ge.s32.totalorder %s508_s18, 4   ;;  %s594_s12 = smov %s449_s13 }
 0x13a   : > { %s595_s13 = smov %s453_s14  ;;  %s596_s14 = smov %s519_s21 }
 0x13b   : > { %s597_s15 = smov %s508_s18  ;;  %16 = sbr.rel (!%p14_p5) target bundleno = 3 (0x3), region = 78 }
 0x142   :  { %270 = vsyncpa [#allocation3], 1 }
 0x143   :  { %272 = vsyncpa [#allocation3 + $0x1], 1 }

</bundles_post_ra>
